<compile_context>
chip_gen: v7x
topology: tpu7x:2x2x1
jax: 0.10.0
libtpu: 0.0.40
codegen_flags: <defaults>
</compile_context>

<pallas_src>
import functools

import jax
import jax.numpy as jnp
from jax.experimental import pallas as pl
from jax.experimental.pallas import tpu as pltpu

_SQRT_HALF = 0.7071067811865476


def _round_up(a, b):
    return (a + b - 1) // b * b


def _gelu_exact(v):
    # diffusers FeedForward(activation_fn='gelu') == GELU(approximate="none")
    return 0.5 * v * (1.0 + jax.lax.erf(v * _SQRT_HALF))


def _pick_dout_chunk(dout, target):
    """Largest multiple-of-128 divisor of `dout` that is <= target (else dout)."""
    if dout % 128 != 0 or dout <= max(target, 128):
        return dout
    best = 128
    for c in range(128, target + 1, 128):
        if dout % c == 0:
            best = c
    return best


# -----------------------------------------------------------------------------
# Kernel.  Grid = (row_tiles, dout_chunks).
#   j == 0        : (+pe already folded) LN1 -> Linear1 -> exact GELU, cache h2.
#   every j       : one Dout column chunk of Linear2 (w2 chunk streamed by the
#                   auto-pipeline), result into f32 accumulator scratch.
#   j == last     : LN2 over the full Dout row + affine, write output tile.
# -----------------------------------------------------------------------------
def _wan_image_embedding_kernel(x_ref, g1_ref, b1_ref, w1_ref, fb1_ref,
                                w2_ref, fb2_ref, g2_ref, b2_ref,
                                o_ref, acc_ref, h2_ref, *, eps):
    j = pl.program_id(1)
    n_chunks, rows, cn = acc_ref.shape
    d_out = n_chunks * cn

    @pl.when(j == 0)
    def _():
        # FP32LayerNorm semantics: all normalization math in float32.
        x = x_ref[...].astype(jnp.float32)                       # (rows, Din)
        mu = jnp.mean(x, axis=-1, keepdims=True)
        var = jnp.mean(jnp.square(x - mu), axis=-1, keepdims=True)
        h = (x - mu) * jax.lax.rsqrt(var + eps)
        h = h * g1_ref[...].astype(jnp.float32) + b1_ref[...].astype(jnp.float32)
        # Linear1 on the MXU (f32 accumulation), bias + exact GELU in f32.
        h = jnp.dot(h.astype(w1_ref.dtype), w1_ref[...],
                    preferred_element_type=jnp.float32)
        h = h + fb1_ref[...].astype(jnp.float32)
        h = _gelu_exact(h)
        h2_ref[...] = h.astype(h2_ref.dtype)                     # cached for all chunks

    # One Dout column chunk of Linear2 (w2_ref / fb2_ref are the j-th chunk).
    chunk = jnp.dot(h2_ref[...], w2_ref[...], preferred_element_type=jnp.float32)
    chunk = chunk + fb2_ref[...].astype(jnp.float32)
    acc_ref[j] = chunk                                           # (rows, cn) f32

    @pl.when(j == n_chunks - 1)
    def _():
        # LN2 over the full Dout row, chunk-wise (keeps f32 temporaries at
        # (rows, cn) instead of (rows, Dout) -> low VMEM pressure at real dims).
        inv_d = jnp.float32(1.0 / d_out)
        s = jnp.zeros((rows, 1), jnp.float32)
        for jj in range(n_chunks):
            s = s + jnp.sum(acc_ref[jj], axis=-1, keepdims=True)
        mu2 = s * inv_d
        v = jnp.zeros((rows, 1), jnp.float32)
        for jj in range(n_chunks):
            d = acc_ref[jj] - mu2
            v = v + jnp.sum(d * d, axis=-1, keepdims=True)
        rstd = jax.lax.rsqrt(v * inv_d + eps)
        g2 = g2_ref[...].astype(jnp.float32)
        b2 = b2_ref[...].astype(jnp.float32)
        for jj in range(n_chunks):
            lo = jj * cn
            o_ref[:, lo:lo + cn] = ((acc_ref[jj] - mu2) * rstd
                                    * g2[:, lo:lo + cn]
                                    + b2[:, lo:lo + cn]).astype(o_ref.dtype)


# -----------------------------------------------------------------------------
# One-time (model-init) parameter prep: cast MXU weights once, normalize shapes.
# -----------------------------------------------------------------------------
def prepare_wan_image_embedding_params(params, mxu_dtype=jnp.bfloat16):
    din = params["w1"].shape[0]
    dout = params["w2"].shape[1]
    p = {
        "w1": jnp.asarray(params["w1"], mxu_dtype),
        "w2": jnp.asarray(params["w2"], mxu_dtype),
        "g1": jnp.asarray(params["g1"]).reshape(1, din),
        "b1": jnp.asarray(params["b1"]).reshape(1, din),
        "fb1": jnp.asarray(params["fb1"]).reshape(1, din),
        "fb2": jnp.asarray(params["fb2"]).reshape(1, dout),
        "g2": jnp.asarray(params["g2"]).reshape(1, dout),
        "b2": jnp.asarray(params["b2"]).reshape(1, dout),
    }
    if params.get("pos_embed", None) is not None:
        p["pos_embed"] = jnp.asarray(params["pos_embed"])
    return p


# -----------------------------------------------------------------------------
# Wrapper: pos_embed handling, row flattening/padding, BlockSpecs, pallas_call.
# -----------------------------------------------------------------------------
def wan_image_embedding(x, params, *, eps=1e-5, mxu_dtype=jnp.bfloat16,
                        max_rows_per_tile=1024, dout_chunk_target=512,
                        rows_parallel=False):
    """Fused WanImageEmbedding forward.

    mxu_dtype=bfloat16 (default, inference): native bf16 MXU matmuls with f32
    accumulation; LayerNorm / GELU math stays f32.  Pass mxu_dtype=float32 for
    the precision-parity path matching torch's all-f32 FeedForward.
    """
    B, S, Din = x.shape
    w1 = jnp.asarray(params["w1"])
    w2 = jnp.asarray(params["w2"])
    Dout = w2.shape[1]
    out_dtype = x.dtype

    # Weights should already be mxu_dtype (prepare_wan_image_embedding_params);
    # cast only as a fallback so raw f32 checkpoints still work (trace-time check,
    # no-op per call once params are prepared).
    if w1.dtype != mxu_dtype:
        w1 = w1.astype(mxu_dtype)
    if w2.dtype != mxu_dtype:
        w2 = w2.astype(mxu_dtype)

    g1 = jnp.asarray(params["g1"]).reshape(1, Din)
    b1 = jnp.asarray(params["b1"]).reshape(1, Din)
    fb1 = jnp.asarray(params["fb1"]).reshape(1, Din)
    fb2 = jnp.asarray(params["fb2"]).reshape(1, Dout)
    g2 = jnp.asarray(params["g2"]).reshape(1, Dout)
    b2 = jnp.asarray(params["b2"]).reshape(1, Dout)

    # Positional embedding: torch slice / repeat semantics, folded into x with one
    # cheap elementwise pass so the kernel can run on flattened (B*S) rows.
    pos = params.get("pos_embed", None)
    if pos is not None:
        P = pos.shape[1]
        if S <= P:
            pe = pos[:, :S, :]
        else:
            rep = -(-S // P)
            pe = jnp.tile(pos, (1, rep, 1))[:, :S, :]
        x = x + pe.astype(x.dtype)

    # Dout column chunking for the streamed Linear2 weight.
    cn = _pick_dout_chunk(Dout, dout_chunk_target)
    n_chunks = Dout // cn

    # Per-generation VMEM ceiling (v5e/v6e: 128 MiB, v7x: 64 MiB physical).
    try:
        phys_vmem = int(getattr(pltpu.get_tpu_info(), "vmem_capacity_bytes", 64 << 20))
    except Exception:
        phys_vmem = 64 << 20                                     # v7x-safe fallback
    cap = phys_vmem * 3 // 4

    def _isz(dt):
        return jnp.dtype(dt).itemsize

    def _budget(t):
        return int(
            2 * t * Din * _isz(x.dtype)                  # x row blocks (double-buffered)
            + 2 * t * Dout * _isz(out_dtype)             # output blocks
            + 2 * Din * Din * _isz(w1.dtype)             # w1
            + 2 * Din * cn * _isz(w2.dtype)              # w2 column chunk
            + 2 * (3 * Din + 2 * Dout + cn) * 4          # LN affine / biases
            + n_chunks * t * cn * 4                      # pre-LN2 accumulator (f32)
            + t * Din * _isz(mxu_dtype)                  # cached post-GELU activations
            + 4 * t * (Din + cn) * 4                     # f32 temporaries headroom
        )

    # Flatten (B, S) into one row axis; one big tile covering the whole padded
    # sequence (shrunk in halves only if it would not fit the VMEM ceiling).
    N = B * S
    ROW_ALIGN = 16                                       # covers f32 (8) / bf16 (16) packing
    tile = min(max_rows_per_tile, _round_up(N, ROW_ALIGN))
    tile = _round_up(tile, ROW_ALIGN)
    while tile > ROW_ALIGN and _budget(tile) + (8 << 20) > cap:
        tile = _round_up(max(ROW_ALIGN, tile // 2), ROW_ALIGN)
    Np = _round_up(N, tile)

    x_flat = x.reshape(N, Din)
    if Np != N:
        # TODO(synk): when S is static per model, pad once at setup instead of per call.
        x_flat = jnp.pad(x_flat, ((0, Np - N), (0, 0)))
    n_row_tiles = Np // tile

    grid = (n_row_tiles, n_chunks)

    def const(shape):
        return pl.BlockSpec(shape, lambda i, j: (0, 0))

    in_specs = [
        pl.BlockSpec((tile, Din), lambda i, j: (i, 0)),   # x rows (fetched once per i)
        const((1, Din)), const((1, Din)),                 # norm1 gamma / beta
        const((Din, Din)), const((1, Din)),               # ff linear1 W / b
        pl.BlockSpec((Din, cn), lambda i, j: (0, j)),     # ff linear2 W column chunk
        pl.BlockSpec((1, cn), lambda i, j: (0, j)),       # ff linear2 bias chunk
        const((1, Dout)), const((1, Dout)),               # norm2 gamma / beta
    ]
    out_specs = pl.BlockSpec((tile, Dout), lambda i, j: (i, 0))
    scratch_shapes = [
        pltpu.VMEM((n_chunks, tile, cn), jnp.float32),    # pre-LN2 accumulator
        pltpu.VMEM((tile, Din), mxu_dtype),               # cached post-GELU activations
    ]

    vmem_limit = int(max(32 << 20, min(_budget(tile) + (8 << 20), cap)))

    kernel = functools.partial(_wan_image_embedding_kernel, eps=eps)

    out = pl.pallas_call(
        kernel,
        out_shape=jax.ShapeDtypeStruct((Np, Dout), out_dtype),
        grid=grid,
        in_specs=in_specs,
        out_specs=out_specs,
        scratch_shapes=scratch_shapes,
        compiler_params=pltpu.CompilerParams(
            # Weight-DMA bound at real Wan sizes: keep on one TC (v7x) instead of
            # duplicating the weight fetch per core.  rows_parallel=True shards
            # the row axis for large, compute-bound batched-frame cases.
            dimension_semantics=(
                ("parallel" if rows_parallel else "arbitrary"), "arbitrary"),
            vmem_limit_bytes=vmem_limit,
        ),
    )(x_flat, g1, b1, w1, fb1, w2, fb2, g2, b2)

    return out[:N].reshape(B, S, Dout)


# -----------------------------------------------------------------------------
# Pure-JAX reference (same math, f32 matmuls) for correctness checks.
# -----------------------------------------------------------------------------
def wan_image_embedding_ref(x, params, eps=1e-5):
    pos = params.get("pos_embed", None)
    B, S, Din = x.shape
    if pos is not None:
        P = pos.shape[1]
        if S <= P:
            pe = pos[:, :S, :]
        else:
            rep = -(-S // P)
            pe = jnp.tile(pos, (1, rep, 1))[:, :S, :]
        x = x + pe.astype(x.dtype)

    def ln(v, g, b):
        v32 = v.astype(jnp.float32)
        mu = jnp.mean(v32, axis=-1, keepdims=True)
        var = jnp.mean(jnp.square(v32 - mu), axis=-1, keepdims=True)
        return ((v32 - mu) * jax.lax.rsqrt(var + eps) * g.reshape(1, 1, -1)
                + b.reshape(1, 1, -1))

    hp = jax.lax.Precision.HIGHEST
    h = ln(x, params["g1"], params["b1"])
    h = jnp.dot(h, params["w1"].astype(jnp.float32), precision=hp)
    h = h + params["fb1"].reshape(1, 1, -1)
    h = _gelu_exact(h)
    h = jnp.dot(h, params["w2"].astype(jnp.float32), precision=hp)
    h = h + params["fb2"].reshape(1, 1, -1)
    h = ln(h, params["g2"], params["b2"])
    return h.astype(x.dtype)


if __name__ == "__main__":
    key = jax.random.PRNGKey(0)
    B, S, Din, Dout, Ppos = 2, 8, 32, 64, 6     # Ppos < S exercises the repeat path
    ks = jax.random.split(key, 10)

    x = jax.random.normal(ks[0], (B, S, Din), jnp.float32)

    # Deterministic synthetic parameters (not a checkpoint load).
    params = dict(
        g1=1.0 + 0.1 * jax.random.normal(ks[1], (1, Din), jnp.float32),
        b1=0.1 * jax.random.normal(ks[2], (1, Din), jnp.float32),
        w1=jax.random.normal(ks[3], (Din, Din), jnp.float32) / (Din ** 0.5),
        fb1=0.1 * jax.random.normal(ks[4], (1, Din), jnp.float32),
        w2=jax.random.normal(ks[5], (Din, Dout), jnp.float32) / (Din ** 0.5),
        fb2=0.1 * jax.random.normal(ks[6], (1, Dout), jnp.float32),
        g2=1.0 + 0.1 * jax.random.normal(ks[7], (1, Dout), jnp.float32),
        b2=0.1 * jax.random.normal(ks[8], (1, Dout), jnp.float32),
        # module inits pos_embed to zeros; small random values so the add matters
        pos_embed=0.02 * jax.random.normal(ks[9], (1, Ppos, Din), jnp.float32),
    )

    ref = wan_image_embedding_ref(x, params)

    # 1) f32 precision-parity path (explicit opt-in) — tight match vs. reference.
    fwd_f32 = jax.jit(functools.partial(wan_image_embedding, mxu_dtype=jnp.float32))
    out_f32 = fwd_f32(x, params)
    jax.block_until_ready(out_f32)
    assert out_f32.shape == (B, S, Dout), out_f32.shape
    err_f32 = float(jnp.max(jnp.abs(out_f32 - ref)))
    assert err_f32 < 5e-4, f"f32 path mismatch: {err_f32}"

    # 2) default fast path: bf16 weights cached ONCE at init, bf16 MXU, f32 acc.
    prepared = prepare_wan_image_embedding_params(params, jnp.bfloat16)
    fwd_bf16 = jax.jit(wan_image_embedding)
    out_bf16 = fwd_bf16(x, prepared)
    jax.block_until_ready(out_bf16)
    assert out_bf16.shape == (B, S, Dout), out_bf16.shape
    err_bf16 = float(jnp.max(jnp.abs(out_bf16.astype(jnp.float32) - ref)))
    assert err_bf16 < 1e-1, f"bf16 path mismatch: {err_bf16}"

    # 3) module variant with pos_embed_seq_len=None (no pos_embed parameter).
    params_nope = {k: v for k, v in params.items() if k != "pos_embed"}
    out_np = fwd_f32(x, params_nope)
    jax.block_until_ready(out_np)
    ref_np = wan_image_embedding_ref(x, params_nope)
    err_np = float(jnp.max(jnp.abs(out_np - ref_np)))
    assert err_np < 5e-4, f"no-pos-embed mismatch: {err_np}"

    print("KERNEL_OK")
</pallas_src>

<mosaic_0001>
module attributes {stable_mosaic.version = 11 : i64} {
  func.func @_wan_image_embedding_kernel(%arg0: i32, %arg1: i32, %arg2: memref<16x32xf32, #tpu.memory_space<vmem>>, %arg3: memref<1x32xf32, #tpu.memory_space<vmem>>, %arg4: memref<1x32xf32, #tpu.memory_space<vmem>>, %arg5: memref<32x32xf32, #tpu.memory_space<vmem>>, %arg6: memref<1x32xf32, #tpu.memory_space<vmem>>, %arg7: memref<32x64xf32, #tpu.memory_space<vmem>>, %arg8: memref<1x64xf32, #tpu.memory_space<vmem>>, %arg9: memref<1x64xf32, #tpu.memory_space<vmem>>, %arg10: memref<1x64xf32, #tpu.memory_space<vmem>>, %arg11: memref<16x64xf32, #tpu.memory_space<vmem>>, %arg12: memref<1x16x64xf32, #tpu.memory_space<vmem>>, %arg13: memref<16x32xf32, #tpu.memory_space<vmem>>) attributes {dimension_semantics = [#tpu.dimension_semantics<arbitrary>, #tpu.dimension_semantics<arbitrary>], iteration_bounds = array<i64: 1, 1>, scalar_prefetch = 0 : i64, scratch_operands = 2 : i64, tpu.core_type = #tpu.core_type<tc>, window_params = [{transform_indices = @transform_0, window_bounds = array<i64: 16, 32>}, {pipeline_mode = #tpu.pipeline_mode<synchronous>, transform_indices = @transform_1, window_bounds = array<i64: 1, 32>}, {pipeline_mode = #tpu.pipeline_mode<synchronous>, transform_indices = @transform_2, window_bounds = array<i64: 1, 32>}, {pipeline_mode = #tpu.pipeline_mode<synchronous>, transform_indices = @transform_3, window_bounds = array<i64: 32, 32>}, {pipeline_mode = #tpu.pipeline_mode<synchronous>, transform_indices = @transform_4, window_bounds = array<i64: 1, 32>}, {transform_indices = @transform_5, window_bounds = array<i64: 32, 64>}, {transform_indices = @transform_6, window_bounds = array<i64: 1, 64>}, {pipeline_mode = #tpu.pipeline_mode<synchronous>, transform_indices = @transform_7, window_bounds = array<i64: 1, 64>}, {pipeline_mode = #tpu.pipeline_mode<synchronous>, transform_indices = @transform_8, window_bounds = array<i64: 1, 64>}, {transform_indices = @transform_9, window_bounds = array<i64: 16, 64>}]} {
    %c0_i32 = arith.constant 0 : i32
    %0 = arith.cmpi eq, %arg1, %c0_i32 : i32
    %1 = arith.extui %0 : i1 to i32
    %c0_i32_0 = arith.constant 0 : i32
    %2 = arith.cmpi ne, %1, %c0_i32_0 : i32
    scf.if %2 {
      %c0_10 = arith.constant 0 : index
      %c0_11 = arith.constant 0 : index
      %16 = vector.load %arg2[%c0_10, %c0_11] : memref<16x32xf32, #tpu.memory_space<vmem>>, vector<16x32xf32>
      %cst_12 = arith.constant dense<0.000000e+00> : vector<16xf32>
      %17 = vector.multi_reduction <add>, %16, %cst_12 [1] : vector<16x32xf32> to vector<16xf32>
      %18 = vector.shape_cast %17 : vector<16xf32> to vector<16x1xf32>
      %cst_13 = arith.constant 3.200000e+01 : f32
      %19 = vector.broadcast %cst_13 : f32 to vector<16x1xf32>
      %20 = arith.divf %18, %19 : vector<16x1xf32>
      %21 = vector.broadcast %20 : vector<16x1xf32> to vector<16x32xf32>
      %22 = arith.subf %16, %21 : vector<16x32xf32>
      %23 = arith.mulf %22, %22 : vector<16x32xf32>
      %cst_14 = arith.constant dense<0.000000e+00> : vector<16xf32>
      %24 = vector.multi_reduction <add>, %23, %cst_14 [1] : vector<16x32xf32> to vector<16xf32>
      %25 = vector.shape_cast %24 : vector<16xf32> to vector<16x1xf32>
      %cst_15 = arith.constant 3.200000e+01 : f32
      %26 = vector.broadcast %cst_15 : f32 to vector<16x1xf32>
      %27 = arith.divf %25, %26 : vector<16x1xf32>
      %28 = vector.broadcast %20 : vector<16x1xf32> to vector<16x32xf32>
      %29 = arith.subf %16, %28 : vector<16x32xf32>
      %cst_16 = arith.constant 9.99999974E-6 : f32
      %30 = vector.broadcast %cst_16 : f32 to vector<16x1xf32>
      %31 = arith.addf %27, %30 : vector<16x1xf32>
      %32 = math.rsqrt %31 : vector<16x1xf32>
      %33 = vector.broadcast %32 : vector<16x1xf32> to vector<16x32xf32>
      %34 = arith.mulf %29, %33 : vector<16x32xf32>
      %c0_17 = arith.constant 0 : index
      %c0_18 = arith.constant 0 : index
      %35 = vector.load %arg3[%c0_17, %c0_18] : memref<1x32xf32, #tpu.memory_space<vmem>>, vector<1x32xf32>
      %36 = vector.broadcast %35 : vector<1x32xf32> to vector<16x32xf32>
      %37 = arith.mulf %34, %36 : vector<16x32xf32>
      %c0_19 = arith.constant 0 : index
      %c0_20 = arith.constant 0 : index
      %38 = vector.load %arg4[%c0_19, %c0_20] : memref<1x32xf32, #tpu.memory_space<vmem>>, vector<1x32xf32>
      %39 = vector.broadcast %38 : vector<1x32xf32> to vector<16x32xf32>
      %40 = arith.addf %37, %39 : vector<16x32xf32>
      %c0_21 = arith.constant 0 : index
      %c0_22 = arith.constant 0 : index
      %41 = vector.load %arg5[%c0_21, %c0_22] : memref<32x32xf32, #tpu.memory_space<vmem>>, vector<32x32xf32>
      %cst_23 = arith.constant dense<0.000000e+00> : vector<16x32xf32>
      %42 = tpu.matmul %40, %41, %cst_23 {dimension_numbers = #tpu.dot_dimension_numbers<[1], [0], [0], [1], [0, 0, 1, 1], [], []>} : vector<16x32xf32>, vector<32x32xf32>, vector<16x32xf32> -> vector<16x32xf32>
      %c0_24 = arith.constant 0 : index
      %c0_25 = arith.constant 0 : index
      %43 = vector.load %arg6[%c0_24, %c0_25] : memref<1x32xf32, #tpu.memory_space<vmem>>, vector<1x32xf32>
      %44 = vector.broadcast %43 : vector<1x32xf32> to vector<16x32xf32>
      %45 = arith.addf %42, %44 : vector<16x32xf32>
      %cst_26 = arith.constant 5.000000e-01 : f32
      %46 = vector.broadcast %cst_26 : f32 to vector<16x32xf32>
      %47 = arith.mulf %46, %45 : vector<16x32xf32>
      %cst_27 = arith.constant 0.707106769 : f32
      %48 = vector.broadcast %cst_27 : f32 to vector<16x32xf32>
      %49 = arith.mulf %45, %48 : vector<16x32xf32>
      %50 = math.erf %49 : vector<16x32xf32>
      %cst_28 = arith.constant 1.000000e+00 : f32
      %51 = vector.broadcast %cst_28 : f32 to vector<16x32xf32>
      %52 = arith.addf %51, %50 : vector<16x32xf32>
      %53 = arith.mulf %47, %52 : vector<16x32xf32>
      %c0_29 = arith.constant 0 : index
      %c0_30 = arith.constant 0 : index
      %54 = vector.load %arg13[%c0_29, %c0_30] : memref<16x32xf32, #tpu.memory_space<vmem>>, vector<16x32xf32>
      tpu.vector_store %arg13[%c0_29, %c0_30], %53 {strides = array<i32>} : memref<16x32xf32, #tpu.memory_space<vmem>>, vector<16x32xf32>,
    } else {
    }
    %c0 = arith.constant 0 : index
    %c0_1 = arith.constant 0 : index
    %3 = vector.load %arg13[%c0, %c0_1] : memref<16x32xf32, #tpu.memory_space<vmem>>, vector<16x32xf32>
    %c0_2 = arith.constant 0 : index
    %c0_3 = arith.constant 0 : index
    %4 = vector.load %arg7[%c0_2, %c0_3] : memref<32x64xf32, #tpu.memory_space<vmem>>, vector<32x64xf32>
    %cst = arith.constant dense<0.000000e+00> : vector<16x64xf32>
    %5 = tpu.matmul %3, %4, %cst {dimension_numbers = #tpu.dot_dimension_numbers<[1], [0], [0], [1], [0, 0, 1, 1], [], []>} : vector<16x32xf32>, vector<32x64xf32>, vector<16x64xf32> -> vector<16x64xf32>
    %c0_4 = arith.constant 0 : index
    %c0_5 = arith.constant 0 : index
    %6 = vector.load %arg8[%c0_4, %c0_5] : memref<1x64xf32, #tpu.memory_space<vmem>>, vector<1x64xf32>
    %7 = vector.broadcast %6 : vector<1x64xf32> to vector<16x64xf32>
    %8 = arith.addf %5, %7 : vector<16x64xf32>
    %9 = arith.index_cast %arg1 : i32 to index
    %c0_6 = arith.constant 0 : index
    %c0_7 = arith.constant 0 : index
    %10 = vector.load %arg12[%9, %c0_6, %c0_7] : memref<1x16x64xf32, #tpu.memory_space<vmem>>, vector<1x16x64xf32>
    %11 = vector.shape_cast %10 : vector<1x16x64xf32> to vector<16x64xf32>
    %12 = vector.shape_cast %8 : vector<16x64xf32> to vector<1x16x64xf32>
    tpu.vector_store %arg12[%9, %c0_6, %c0_7], %12 {strides = array<i32>} : memref<1x16x64xf32, #tpu.memory_space<vmem>>, vector<1x16x64xf32>,
    %c0_i32_8 = arith.constant 0 : i32
    %13 = arith.cmpi eq, %arg1, %c0_i32_8 : i32
    %14 = arith.extui %13 : i1 to i32
    %c0_i32_9 = arith.constant 0 : i32
    %15 = arith.cmpi ne, %14, %c0_i32_9 : i32
    scf.if %15 {
      %cst_10 = arith.constant 0.000000e+00 : f32
      %16 = vector.broadcast %cst_10 : f32 to vector<16x1xf32>
      %c0_11 = arith.constant 0 : index
      %c0_12 = arith.constant 0 : index
      %c0_13 = arith.constant 0 : index
      %17 = vector.load %arg12[%c0_11, %c0_12, %c0_13] : memref<1x16x64xf32, #tpu.memory_space<vmem>>, vector<1x16x64xf32>
      %18 = vector.shape_cast %17 : vector<1x16x64xf32> to vector<16x64xf32>
      %cst_14 = arith.constant dense<0.000000e+00> : vector<16xf32>
      %19 = vector.multi_reduction <add>, %18, %cst_14 [1] : vector<16x64xf32> to vector<16xf32>
      %20 = vector.shape_cast %19 : vector<16xf32> to vector<16x1xf32>
      %21 = arith.addf %16, %20 : vector<16x1xf32>
      %cst_15 = arith.constant 1.562500e-02 : f32
      %22 = vector.broadcast %cst_15 : f32 to vector<16x1xf32>
      %23 = arith.mulf %21, %22 : vector<16x1xf32>
      %cst_16 = arith.constant 0.000000e+00 : f32
      %24 = vector.broadcast %cst_16 : f32 to vector<16x1xf32>
      %c0_17 = arith.constant 0 : index
      %c0_18 = arith.constant 0 : index
      %c0_19 = arith.constant 0 : index
      %25 = vector.load %arg12[%c0_17, %c0_18, %c0_19] : memref<1x16x64xf32, #tpu.memory_space<vmem>>, vector<1x16x64xf32>
      %26 = vector.shape_cast %25 : vector<1x16x64xf32> to vector<16x64xf32>
      %27 = vector.broadcast %23 : vector<16x1xf32> to vector<16x64xf32>
      %28 = arith.subf %26, %27 : vector<16x64xf32>
      %29 = arith.mulf %28, %28 : vector<16x64xf32>
      %cst_20 = arith.constant dense<0.000000e+00> : vector<16xf32>
      %30 = vector.multi_reduction <add>, %29, %cst_20 [1] : vector<16x64xf32> to vector<16xf32>
      %31 = vector.shape_cast %30 : vector<16xf32> to vector<16x1xf32>
      %32 = arith.addf %24, %31 : vector<16x1xf32>
      %cst_21 = arith.constant 1.562500e-02 : f32
      %33 = vector.broadcast %cst_21 : f32 to vector<16x1xf32>
      %34 = arith.mulf %32, %33 : vector<16x1xf32>
      %cst_22 = arith.constant 9.99999974E-6 : f32
      %35 = vector.broadcast %cst_22 : f32 to vector<16x1xf32>
      %36 = arith.addf %34, %35 : vector<16x1xf32>
      %37 = math.rsqrt %36 : vector<16x1xf32>
      %c0_23 = arith.constant 0 : index
      %c0_24 = arith.constant 0 : index
      %38 = vector.load %arg9[%c0_23, %c0_24] : memref<1x64xf32, #tpu.memory_space<vmem>>, vector<1x64xf32>
      %c0_25 = arith.constant 0 : index
      %c0_26 = arith.constant 0 : index
      %39 = vector.load %arg10[%c0_25, %c0_26] : memref<1x64xf32, #tpu.memory_space<vmem>>, vector<1x64xf32>
      %c0_27 = arith.constant 0 : index
      %c0_28 = arith.constant 0 : index
      %c0_29 = arith.constant 0 : index
      %40 = vector.load %arg12[%c0_27, %c0_28, %c0_29] : memref<1x16x64xf32, #tpu.memory_space<vmem>>, vector<1x16x64xf32>
      %41 = vector.shape_cast %40 : vector<1x16x64xf32> to vector<16x64xf32>
      %42 = vector.broadcast %23 : vector<16x1xf32> to vector<16x64xf32>
      %43 = arith.subf %41, %42 : vector<16x64xf32>
      %44 = vector.broadcast %37 : vector<16x1xf32> to vector<16x64xf32>
      %45 = arith.mulf %43, %44 : vector<16x64xf32>
      %46 = vector.broadcast %38 : vector<1x64xf32> to vector<16x64xf32>
      %47 = arith.mulf %45, %46 : vector<16x64xf32>
      %48 = vector.broadcast %39 : vector<1x64xf32> to vector<16x64xf32>
      %49 = arith.addf %47, %48 : vector<16x64xf32>
      %c0_30 = arith.constant 0 : index
      %c0_31 = arith.constant 0 : index
      %50 = vector.load %arg11[%c0_30, %c0_31] : memref<16x64xf32, #tpu.memory_space<vmem>>, vector<16x64xf32>
      tpu.vector_store %arg11[%c0_30, %c0_31], %49 {strides = array<i32>} : memref<16x64xf32, #tpu.memory_space<vmem>>, vector<16x64xf32>,
    } else {
    }
    return
  }
  func.func @transform_0(%arg0: i32, %arg1: i32) -> (i32, i32) {
    %c0_i32 = arith.constant 0 : i32
    %c0_i32_0 = arith.constant 0 : i32
    return %arg0, %c0_i32 : i32, i32
  }
  func.func @transform_1(%arg0: i32, %arg1: i32) -> (i32, i32) {
    %c0_i32 = arith.constant 0 : i32
    %c0_i32_0 = arith.constant 0 : i32
    %c0_i32_1 = arith.constant 0 : i32
    return %c0_i32, %c0_i32_0 : i32, i32
  }
  func.func @transform_2(%arg0: i32, %arg1: i32) -> (i32, i32) {
    %c0_i32 = arith.constant 0 : i32
    %c0_i32_0 = arith.constant 0 : i32
    %c0_i32_1 = arith.constant 0 : i32
    return %c0_i32, %c0_i32_0 : i32, i32
  }
  func.func @transform_3(%arg0: i32, %arg1: i32) -> (i32, i32) {
    %c0_i32 = arith.constant 0 : i32
    %c0_i32_0 = arith.constant 0 : i32
    %c0_i32_1 = arith.constant 0 : i32
    return %c0_i32, %c0_i32_0 : i32, i32
  }
  func.func @transform_4(%arg0: i32, %arg1: i32) -> (i32, i32) {
    %c0_i32 = arith.constant 0 : i32
    %c0_i32_0 = arith.constant 0 : i32
    %c0_i32_1 = arith.constant 0 : i32
    return %c0_i32, %c0_i32_0 : i32, i32
  }
  func.func @transform_5(%arg0: i32, %arg1: i32) -> (i32, i32) {
    %c0_i32 = arith.constant 0 : i32
    %c0_i32_0 = arith.constant 0 : i32
    return %c0_i32, %arg1 : i32, i32
  }
  func.func @transform_6(%arg0: i32, %arg1: i32) -> (i32, i32) {
    %c0_i32 = arith.constant 0 : i32
    %c0_i32_0 = arith.constant 0 : i32
    return %c0_i32, %arg1 : i32, i32
  }
  func.func @transform_7(%arg0: i32, %arg1: i32) -> (i32, i32) {
    %c0_i32 = arith.constant 0 : i32
    %c0_i32_0 = arith.constant 0 : i32
    %c0_i32_1 = arith.constant 0 : i32
    return %c0_i32, %c0_i32_0 : i32, i32
  }
  func.func @transform_8(%arg0: i32, %arg1: i32) -> (i32, i32) {
    %c0_i32 = arith.constant 0 : i32
    %c0_i32_0 = arith.constant 0 : i32
    %c0_i32_1 = arith.constant 0 : i32
    return %c0_i32, %c0_i32_0 : i32, i32
  }
  func.func @transform_9(%arg0: i32, %arg1: i32) -> (i32, i32) {
    %c0_i32 = arith.constant 0 : i32
    %c0_i32_0 = arith.constant 0 : i32
    return %arg0, %c0_i32 : i32, i32
  }
}

</mosaic_0001>

<bundles_post_ra>
// kernel: wan_image_embedding.1
= control target key start
LH: loop header
LB: loop body
LE: loop exit
PB: predicated region body
PF: predicated region fallthrough
CT: control target
= control target key end

     0   :  { %vm39_vm0 = vcmask 261120   ;;  %s590_s0 = inlined_call_operand.vmem [shape: f32[16,32], index: 0, kind: input, shape index: {}]   ;;  %s591_s1 = inlined_call_operand.vmem [shape: f32[1,32], index: 1, kind: input, shape index: {}]   ;;  %s592_s2 = inlined_call_operand.vmem [shape: f32[1,32], index: 2, kind: input, shape index: {}]   ;;  %s593_s3 = inlined_call_operand.vmem [shape: f32[32,32], index: 3, kind: input, shape index: {}]   ;;  %s594_s4 = inlined_call_operand.vmem [shape: f32[1,32], index: 4, kind: input, shape index: {}]   ;;  %s595_s5 = inlined_call_operand.vmem [shape: f32[32,64], index: 5, kind: input, shape index: {}]   ;;  %s596_s6 = inlined_call_operand.vmem [shape: f32[1,64], index: 6, kind: input, shape index: {}]   ;;  %s597_s7 = inlined_call_operand.vmem [shape: f32[1,64], index: 7, kind: input, shape index: {}]   ;;  %s598_s8 = inlined_call_operand.vmem [shape: f32[1,64], index: 8, kind: input, shape index: {}]   ;;  %s599_s9 = inlined_call_operand.hbm [shape: f32[16,64], index: 9, kind: output, shape index: {}]  }
   0x1   :  { %v37_v0 = vld [vmem:[%s590_s0] sm:$0xff]  ;;  %v38_v1 = vld [vmem:[%s590_s0 + $0x8] sm:$0xff] }
   0x2   :  { %14 = vsyncpa [#allocation5], 0  ;;  %v40_v2 = vsel %vm39_vm0, %v37_v0, 0.0  ;;  %v43_v3 = vsel %vm39_vm0, %v38_v1, 0.0  ;;  %v85_v14 = vld [vmem:[%s593_s3] sm:$0xff]  ;;  %v86_v15 = vld [vmem:[%s593_s3 + $0x8] sm:$0xff] }
   0x3   :  { %41 = vadd.xlane.f32.xlu0 %v40_v2  ;;  %v87_v16 = vld [vmem:[%s593_s3 + $0x10] sm:$0xff]  ;;  %v404_v17 = vpack.c.bf16 %v86_v15, %v85_v14  ;;  %v88_v18 = vld [vmem:[%s593_s3 + $0x18] sm:$0xff]  ;;  %v360_v27 = vld [vmem:[%s591_s1] ss:$0 sm:$0xff]  ;;  %vm286_vm1 = vcmask 523264   ;;  %s459_s0 = smov [#allocation4]  }
   0x4   :  { %v408_v19 = vpack.c.bf16 %v88_v18, %v87_v16  ;;  %v361_v29 = vld [vmem:[%s592_s2] ss:$0 sm:$0xff]  ;;  %v192_v37 = vld [vmem:[%s595_s5 + $0x8] sm:$0xff]  ;;  %v193_v39 = vld [vmem:[%s595_s5 + $0x10] sm:$0xff]  ;;  %s349_s13 = sshll.u32 %s459_s0, 4  ;;  %s350_s13 = int_to_ptr.vmem [resolvable:$true] %s349_s13 }
   0x5   :  { %405 = vmatprep.subr.bf16.mxu0 %v404_v17  ;;  %v191_v36 = vld [vmem:[%s595_s5] sm:$0xff]  ;;  %v194_v40 = vld [vmem:[%s595_s5 + $0x18] sm:$0xff]  ;;  %s435_s14 = scalar_lea.vmem %s350_s13, 256  ;;  %p440_p1 = scmp.lt.s32.totalorder %s350_s13, %s350_s13 }
   0x6   :  { %407 = vmatpush3.bf16.msra.mxu0 %v404_v17  ;;  %v412_v38 = vpack.c.bf16 %v192_v37, %v191_v36  ;;  %v416_v41 = vpack.c.bf16 %v194_v40, %v193_v39  ;;  %v362_v42 = vld [vmem:[%s594_s4] ss:$0 sm:$0xff]  ;;  %p436_p0 = scmp.ne.s32.totalorder %s350_s13, %s435_s14  ;;  %p441_p2 = scmp.lt.s32.totalorder %s435_s14, %s435_s14 }
   0x7   :  { %44 = vadd.xlane.f32.xlu0 %v43_v3  ;;  %409 = vmatprep.subr.bf16.mxu0 %v408_v19  ;;  %v365_v59 = vld [vmem:[%s596_s6] ss:$0 sm:$0xff] }
   0x8   :  { %413 = vmatprep.subr.bf16.mxu1 %v412_v38  ;;  %p442_p3 = por %p441_p2, %p440_p1 }
   0x9   :  { %415 = vmatpush3.bf16.msra.mxu1 %v412_v38 }
   0xa   :  { %411 = vmatpush3.bf16.msra.mxu0 %v408_v19  ;;  %417 = vmatprep.subr.bf16.mxu1 %v416_v41  ;;  %p443_p4 = pnand %p442_p3, %p436_p0 }
   0xd   :  { %419 = vmatpush3.bf16.msra.mxu1 %v416_v41 }
  0x90   :  { %v42_v4 = vpop.xlane.xlu0 %41 }
  0x91   :  { %v47_v5 = vmul.f32 0.03125, %v42_v4 }
  0x93   :  { %v49_v6 = vsub.f32 %v37_v0, %v47_v5 }
  0x94   :  { %v45_v7 = vpop.xlane.xlu0 %44 }
  0x95   :  { %v48_v8 = vmul.f32 0.03125, %v45_v7  ;;  %v51_v9 = vmul.f32 %v49_v6, %v49_v6 }
  0x97   :  { %v50_v10 = vsub.f32 %v38_v1, %v48_v8  ;;  %v53_v11 = vsel %vm39_vm0, %v51_v9, 0.0 }
  0x98   :  { %54 = vadd.xlane.f32.xlu1 %v53_v11 }
  0x99   :  { %v52_v12 = vmul.f32 %v50_v10, %v50_v10 }
  0x9b   :  { %v56_v13 = vsel %vm39_vm0, %v52_v12, 0.0 }
  0x9c   :  { %57 = vadd.xlane.f32.xlu1 %v56_v13 }
 0x125   :  { %v55_v20 = vpop.xlane.xlu1 %54 }
 0x126   :  { %v59_v21 = vmul.f32 0.03125, %v55_v20 }
 0x128   :  { %v61_v22 = vadd.f32 1e-05, %v59_v21  ;;  %v368_v21 = vld [vmem:[%s597_s7] ss:$0 sm:$0xff] }
 0x129   :  { %v58_v23 = vpop.xlane.xlu1 %57 }
 0x12a   :  { %423 = vrsqrt.f32 %v61_v22  ;;  %v60_v24 = vmul.f32 0.03125, %v58_v23 }
 0x12c   :  { %v62_v25 = vadd.f32 1e-05, %v60_v24 }
 0x12e   :  { %425 = vrsqrt.f32 %v62_v25  ;;  %v369_v25 = vld [vmem:[%s598_s8] ss:$0 sm:$0xff] }
 0x134   :  { %v424_v26 = vpop.eup %423 }
 0x135   :  { %v65_v28 = vmul.f32 %v424_v26, %v49_v6 }
 0x137   :  { %v74_v30 = vmul.f32 %v360_v27, %v65_v28 }
 0x138   :  { %v426_v31 = vpop.eup %425 }
 0x139   :  { %v66_v32 = vmul.f32 %v426_v31, %v50_v10  ;;  %v83_v33 = vadd.f32 %v361_v29, %v74_v30 }
 0x13b   :  { %v75_v34 = vmul.f32 %v360_v27, %v66_v32  ;;  %390 = vmatprep.mubr.msk.f32.mxu0 %vm39_vm0, %v83_v33 }
 0x13d   :  { %v84_v35 = vadd.f32 %v361_v29, %v75_v34 }
 0x13f   :  { %391 = vmatmul.mubr.msk.f32.vlgmr.msra.gmra.mrb[0].mxu0 %vm39_vm0, %v84_v35 }
 0x212   :  { %v392_v43 = vpop.f32.mrb[0].mxu0 }
 0x213   :  { %v174_v44 = vadd.f32 %v392_v43, %v362_v42  ;;  %v168_v45 = vpop.f32.mrb[1].mxu0 }
 0x214   :  { %v169_v46 = vadd.f32 %v362_v42, %v168_v45 }
 0x215   :  { %v180_v47 = vmul.f32 0.70710677, %v174_v44  ;;  %v178_v51 = vmul.f32 0.5, %v174_v44 }
 0x216   :  { %v179_v48 = vmul.f32 0.70710677, %v169_v46  ;;  %v177_v53 = vmul.f32 0.5, %v169_v46 }
 0x217   :  { %427 = verf.f32 %v180_v47 }
 0x218   :  { %429 = verf.f32 %v179_v48 }
 0x221   :  { %v428_v49 = vpop.eup %427 }
 0x222   :  { %v430_v50 = vpop.eup %429  ;;  %v184_v52 = vadd.f32 1.0, %v428_v49 }
 0x223   :  { %v183_v54 = vadd.f32 1.0, %v430_v50 }
 0x224   :  { %v186_v55 = vmul.f32 %v184_v52, %v178_v51 }
 0x225   :  { %v185_v56 = vmul.f32 %v183_v54, %v177_v53 }
 0x226   :  { %188 = vst.msk [vmem:[#allocation3 + $0x8] sm:$0xff] %vm39_vm0, %v186_v55 }
 0x227   :  { %187 = vst.msk [vmem:[#allocation3] sm:$0xff] %vm39_vm0, %v185_v56 }
 0x22d   :  { %v190_v58 = vld [vmem:[#allocation3 + $0x8] sm:$0xff] }
 0x22e   :  { %v189_v57 = vld [vmem:[#allocation3] sm:$0xff] }
 0x22f   :  { %401 = vmatprep.mubr.msk.f32.mxu1 %vm39_vm0, %v189_v57 }
 0x230   :  { %402 = vmatmul.mubr.msk.f32.vlgmr.msra.gmra.mrb[0].mxu1 %vm39_vm0, %v190_v58 }
 0x303   :  { %v403_v60 = vpop.f32.mrb[0].mxu1 }
 0x304   :  { %v281_v61 = vadd.f32 %v403_v60, %v365_v59  ;;  %v275_v62 = vpop.f32.mrb[1].mxu1 }
 0x305   :  { %v276_v63 = vadd.f32 %v365_v59, %v275_v62 }
 0x306   :  { %288 = vst.msk [vmem:[#allocation2 + $0x8] sm:$0xff] %vm286_vm1, %v281_v61 }
 0x307   :  { %287 = vst.msk [vmem:[#allocation2] sm:$0xff] %vm286_vm1, %v276_v63 }
 0x30d   :  { %v293_v0 = vld [vmem:[#allocation2 + $0x8] sm:$0xff] }
 0x30e   :  { %v297_v1 = vsel %vm286_vm1, %v293_v0, 0.0  ;;  %v292_v2 = vld [vmem:[#allocation2] sm:$0xff] }
 0x30f   :  { %298 = vadd.xlane.f32.xlu1 %v297_v1  ;;  %v294_v3 = vsel %vm286_vm1, %v292_v2, 0.0 }
 0x310   :  { %295 = vadd.xlane.f32.xlu0 %v294_v3 }
 0x39c   :  { %v299_v4 = vpop.xlane.xlu1 %298 }
 0x39d   :  { %v303_v5 = vmul.f32 0.015625, %v299_v4  ;;  %v296_v6 = vpop.xlane.xlu0 %295 }
 0x39e   :  { %v302_v7 = vmul.f32 0.015625, %v296_v6 }
 0x39f   :  { %v305_v8 = vsub.f32 %v293_v0, %v303_v5 }
 0x3a0   :  { %v304_v9 = vsub.f32 %v292_v2, %v302_v7 }
 0x3a1   :  { %v307_v10 = vmul.f32 %v305_v8, %v305_v8 }
 0x3a2   :  { %v306_v11 = vmul.f32 %v304_v9, %v304_v9 }
 0x3a3   :  { %v311_v12 = vsel %vm286_vm1, %v307_v10, 0.0 }
 0x3a4   :  { %312 = vadd.xlane.f32.xlu1 %v311_v12  ;;  %v308_v13 = vsel %vm286_vm1, %v306_v11, 0.0 }
 0x3a5   :  { %309 = vadd.xlane.f32.xlu0 %v308_v13 }
 0x431   :  { %v313_v14 = vpop.xlane.xlu1 %312 }
 0x432   :  { %v317_v15 = vmul.f32 0.015625, %v313_v14  ;;  %v310_v16 = vpop.xlane.xlu0 %309 }
 0x433   :  { %v316_v17 = vmul.f32 0.015625, %v310_v16 }
 0x434   :  { %v319_v18 = vadd.f32 1e-05, %v317_v15 }
 0x435   :  { %v318_v19 = vadd.f32 1e-05, %v316_v17 }
 0x436   :  { %431 = vrsqrt.f32 %v319_v18 }
 0x437   :  { %433 = vrsqrt.f32 %v318_v19 }
 0x440   :  { %v432_v20 = vpop.eup %431 }
 0x441   :  { %v434_v22 = vpop.eup %433  ;;  %v325_v23 = vmul.f32 %v432_v20, %v305_v8 }
 0x442   :  { %v324_v24 = vmul.f32 %v434_v22, %v304_v9 }
 0x443   :  { %v333_v26 = vmul.f32 %v368_v21, %v325_v23 }
 0x444   :  { %v332_v27 = vmul.f32 %v368_v21, %v324_v24 }
 0x445   :  { %v341_v28 = vadd.f32 %v369_v25, %v333_v26 }
 0x446   :  { %v340_v29 = vadd.f32 %v369_v25, %v332_v27 }
 0x447   :  { %343 = vst.msk [vmem:[#allocation4 + $0x8] sm:$0xff] %vm286_vm1, %v341_v28 }
 0x448   :  { %342 = vst.msk [vmem:[#allocation4] sm:$0xff] %vm286_vm1, %v340_v29 }
 0x449   :  { %446 = shalt.err (!%p443_p4)
}
 0x44a   :  { %s447_s15 = scalar_lea.hbm %s599_s9, 256 }
 0x44b   :  { %p448_p5 = scmp.ne.s32.totalorder %s599_s9, %s447_s15  ;;  %p451_p6 = scmp.lt.u32.totalorder %s447_s15, %s599_s9 }
 0x44d   :  { %p453_p7 = pnand %p451_p6, %p448_p5 }
 0x44f   :  { %456 = shalt.err (!%p453_p7)
}
 0x450   :  { %s460_s20 = smov 128   ;;  %s461_s21 = smov 8  }
 0x451   :  { %355 = dma.vmem_to_hbm [thread:$0]  %s350_s13, 256, %s599_s9, [#allocation5], %s460_s20, %s460_s20, %s461_s21  }
 0x452   :  { %457 = dma.done.wait [#allocation5], 256  }
 0x453   :  { %458 = vsyncadd [#allocation5], 4294967040 }
 0x454   :  { %359 = vsyncpa [#allocation5], 1 }

</bundles_post_ra>
